<compile_context>
chip_gen: v7x
topology: tpu7x:2x2x1
jax: 0.10.0
libtpu: 0.0.40
codegen_flags: <defaults>
</compile_context>

<pallas_src>
import functools

import jax
import jax.numpy as jnp
from jax.experimental import pallas as pl
from jax.experimental.pallas import tpu as pltpu

LANE = 128
SUBLANE_BF16 = 16     # bf16 packs 16 rows per sublane group


def _round_up(x, m):
    return (x + m - 1) // m * m


def _vmem_cap_bytes():
    """~80% of physical per-TensorCore VMEM (headroom for compiler scratch)."""
    try:
        return int(pltpu.get_tpu_info().vmem_capacity_bytes * 0.8)
    except Exception:
        return 64 * 1024 * 1024


# ----------------------------------------------------------------------------
# Fused Pallas kernel: all SGC layers in one invocation
# ----------------------------------------------------------------------------
def _fused_sgc_kernel(*refs, klist, n_layers):
    """refs = adj, x, W_0..W_{L-1}, b_0..b_{L-1}, out, scratch_a, scratch_b."""
    adj_ref = refs[0]
    x_ref = refs[1]
    w_refs = refs[2:2 + n_layers]
    b_refs = refs[2 + n_layers:2 + 2 * n_layers]
    out_ref = refs[2 + 2 * n_layers]
    bufs = (refs[2 + 2 * n_layers + 1], refs[2 + 2 * n_layers + 2])  # bf16

    # Layer 0 linear applied first: (A^k x) W == A^k (x W); propagation then
    # runs at the padded hidden width.  MXU accumulates in f32.
    h = jnp.dot(x_ref[...], w_refs[0][...], preferred_element_type=jnp.float32)

    src = 0
    for layer in range(n_layers):
        k = klist[layer]
        if k == 0:
            h_f32 = h
        else:
            # Intermediate propagation steps live in bf16 ping-pong scratch
            # (one cast at the producer, none at the consumer).  The final
            # step's f32 accumulator is kept live for bias / activation.
            bufs[src][...] = h.astype(jnp.bfloat16)
            for _ in range(k - 1):
                bufs[1 - src][...] = jnp.dot(
                    adj_ref[...], bufs[src][...],
                    preferred_element_type=jnp.float32).astype(jnp.bfloat16)
                src = 1 - src
            h_f32 = jnp.dot(adj_ref[...], bufs[src][...],
                            preferred_element_type=jnp.float32)

        h_f32 = h_f32 + b_refs[layer][...]          # bias add in f32
        if layer < n_layers - 1:
            # ReLU (f32), cast once, then the next layer's linear (again
            # applied before its propagation).
            h = jnp.dot(jnp.maximum(h_f32, 0.0).astype(jnp.bfloat16),
                        w_refs[layer + 1][...],
                        preferred_element_type=jnp.float32)
        else:
            out_ref[...] = h_f32.astype(out_ref.dtype)


# ----------------------------------------------------------------------------
# Static-operand preparation (runs ONCE; adjacency / weights / biases do not
# change between forwards, so their padding + bf16 cast is hoisted out of the
# per-call path).
# ----------------------------------------------------------------------------
def prepare_static_inputs(adj, params, in_feats):
    n = adj.shape[0]
    np_ = _round_up(n, SUBLANE_BF16)
    dims = [in_feats] + [w.shape[1] for w, _ in params]
    dp = max(_round_up(d, LANE) for d in dims)

    adj_p = jnp.zeros((np_, np_), jnp.bfloat16).at[:n, :n].set(
        adj.astype(jnp.bfloat16))

    w_p, b_p = [], []
    for (w, b) in params:
        din, dout = w.shape
        w_p.append(jnp.zeros((dp, dp), jnp.bfloat16).at[:din, :dout].set(
            w.astype(jnp.bfloat16)))
        b_p.append(jnp.zeros((1, dp), jnp.float32).at[0, :dout].set(b))
    return adj_p, tuple(w_p), tuple(b_p)


# ----------------------------------------------------------------------------
# DeepLinear forward (model='sgc', activation=ReLU, dropout=0 / eval)
# ----------------------------------------------------------------------------
@functools.partial(jax.jit, static_argnames=("klist", "n_classes"))
def deep_linear_forward(adj_p, features, w_p, b_p, klist, n_classes):
    n_layers = len(w_p)
    assert n_layers == len(klist)
    n, in_feats = features.shape
    np_ = adj_p.shape[0]
    dp = w_p[0].shape[1]

    # Only the features need per-call padding.
    x_p = jnp.zeros((np_, dp), jnp.bfloat16).at[:n, :in_feats].set(
        features.astype(jnp.bfloat16))

    kernel = functools.partial(_fused_sgc_kernel, klist=klist,
                               n_layers=n_layers)

    full = lambda i: (0, 0)
    in_specs = (
        [pl.BlockSpec((np_, np_), full),               # A_hat (bf16)
         pl.BlockSpec((np_, dp), full)]                # features (bf16)
        + [pl.BlockSpec((dp, dp), full)] * n_layers    # weights (bf16)
        + [pl.BlockSpec((1, dp), full)] * n_layers     # biases (f32)
    )

    # Cost hint for XLA scheduling around the custom call.
    flops = 2 * np_ * dp * dp * n_layers + 2 * np_ * np_ * dp * sum(klist)
    in_bytes = (adj_p.size * 2 + x_p.size * 2
                + sum(w.size * 2 for w in w_p)
                + sum(b.size * 4 for b in b_p))
    out_bytes = np_ * dp * 4
    bytes_accessed = in_bytes + out_bytes

    # bf16 ping-pong scratch (was f32 -> halved).
    scratch_bytes = 2 * np_ * dp * 2
    # 2x accounts for Pallas' default double-buffering of each BlockSpec even
    # at grid=(1,); at toy sizes the 32 MiB floor dominates anyway.
    vmem_request = 2 * (in_bytes + out_bytes) + scratch_bytes + (4 << 20)
    vmem_limit = int(min(max(vmem_request, 32 * 1024 * 1024), _vmem_cap_bytes()))

    out_p = pl.pallas_call(
        kernel,
        out_shape=jax.ShapeDtypeStruct((np_, dp), jnp.float32),
        grid_spec=pltpu.PrefetchScalarGridSpec(
            num_scalar_prefetch=0,
            grid=(1,),
            in_specs=in_specs,
            out_specs=pl.BlockSpec((np_, dp), full),
            scratch_shapes=[pltpu.VMEM((np_, dp), jnp.bfloat16),
                            pltpu.VMEM((np_, dp), jnp.bfloat16)],
        ),
        compiler_params=pltpu.CompilerParams(
            dimension_semantics=("arbitrary",),
            vmem_limit_bytes=vmem_limit),
        cost_estimate=pl.CostEstimate(flops=flops, transcendentals=0,
                                      bytes_accessed=bytes_accessed),
    )(adj_p, x_p, *w_p, *b_p)

    return out_p[:n, :n_classes]


def deep_linear_reference(adj, features, params, klist):
    """Pure-JAX f32 reference matching the PyTorch forward."""
    h = features
    n_layers = len(params)
    for i, (w, b) in enumerate(params):
        for _ in range(klist[i]):
            h = adj @ h
        h = h @ w + b
        if i < n_layers - 1:
            h = jnp.maximum(h, 0.0)
    return h


# ----------------------------------------------------------------------------
# Deterministic setup
# ----------------------------------------------------------------------------
def build_normalized_adjacency(key, n_nodes, p_edge=0.05):
    """Dense D^-1/2 (A + I) D^-1/2 from a random symmetric adjacency."""
    a = (jax.random.uniform(key, (n_nodes, n_nodes)) < p_edge).astype(jnp.float32)
    a = jnp.maximum(a, a.T)                      # symmetric
    a = a + jnp.eye(n_nodes, dtype=jnp.float32)  # add self-loops
    deg = jnp.sum(a, axis=1)
    d_inv_sqrt = 1.0 / jnp.sqrt(deg)
    return a * d_inv_sqrt[:, None] * d_inv_sqrt[None, :]


def init_linear(key, din, dout):
    """torch.nn.Linear default init: U(-1/sqrt(din), 1/sqrt(din))."""
    kw, kb = jax.random.split(key)
    bound = 1.0 / jnp.sqrt(jnp.float32(din))
    w = jax.random.uniform(kw, (din, dout), jnp.float32, -bound, bound)
    b = jax.random.uniform(kb, (dout,), jnp.float32, -bound, bound)
    return w, b


if __name__ == "__main__":
    # DeepLinear(model='sgc', in_feats=32, n_hidden=32, n_classes=8,
    #            K=4, n_layers=2, activation=ReLU, bias=True, dropout=0)
    N_NODES = 128
    IN_FEATS = 32
    N_HIDDEN = 32
    N_CLASSES = 8
    K = 4
    N_LAYERS = 2

    # klist construction mirrors __init__:
    klist = [K // N_LAYERS for _ in range(N_LAYERS)]
    klist[0] += K % N_LAYERS
    klist = tuple(klist)                          # -> (2, 2), static

    key = jax.random.PRNGKey(0)
    k_adj, k_feat, k_l0, k_l1 = jax.random.split(key, 4)

    adj = build_normalized_adjacency(k_adj, N_NODES)
    features = jax.random.normal(k_feat, (N_NODES, IN_FEATS), jnp.float32)

    # layers: SGC(in_feats -> n_hidden, k0), SGC(n_hidden -> n_classes, k1)
    params = [
        init_linear(k_l0, IN_FEATS, N_HIDDEN),
        init_linear(k_l1, N_HIDDEN, N_CLASSES),
    ]

    # Static operands padded/cast once (hoisted out of the per-call path).
    adj_p, w_p, b_p = prepare_static_inputs(adj, params, IN_FEATS)
    adj_p, w_p, b_p = jax.block_until_ready((adj_p, w_p, b_p))

    out = deep_linear_forward(adj_p, features, w_p, b_p, klist, N_CLASSES)
    out = jax.block_until_ready(out)

    ref = deep_linear_reference(adj, features, params, klist)
    assert out.shape == (N_NODES, N_CLASSES)
    # bf16 MXU operands with f32 accumulation -> looser tolerance than pure f32.
    assert jnp.allclose(out, ref, atol=3e-2, rtol=3e-2), "mismatch vs reference"

    print("KERNEL_OK")
</pallas_src>

<mosaic_0001>
module attributes {stable_mosaic.version = 11 : i64} {
  func.func @_fused_sgc_kernel(%arg0: i32, %arg1: memref<128x128xbf16, #tpu.memory_space<vmem>>, %arg2: memref<128x128xbf16, #tpu.memory_space<vmem>>, %arg3: memref<128x128xbf16, #tpu.memory_space<vmem>>, %arg4: memref<128x128xbf16, #tpu.memory_space<vmem>>, %arg5: memref<1x128xf32, #tpu.memory_space<vmem>>, %arg6: memref<1x128xf32, #tpu.memory_space<vmem>>, %arg7: memref<128x128xf32, #tpu.memory_space<vmem>>, %arg8: memref<128x128xbf16, #tpu.memory_space<vmem>>, %arg9: memref<128x128xbf16, #tpu.memory_space<vmem>>) attributes {dimension_semantics = [#tpu.dimension_semantics<arbitrary>], iteration_bounds = array<i64: 1>, scalar_prefetch = 0 : i64, scratch_operands = 2 : i64, tpu.core_type = #tpu.core_type<tc>, window_params = [{pipeline_mode = #tpu.pipeline_mode<synchronous>, transform_indices = @transform_0, window_bounds = array<i64: 128, 128>}, {pipeline_mode = #tpu.pipeline_mode<synchronous>, transform_indices = @transform_1, window_bounds = array<i64: 128, 128>}, {pipeline_mode = #tpu.pipeline_mode<synchronous>, transform_indices = @transform_2, window_bounds = array<i64: 128, 128>}, {pipeline_mode = #tpu.pipeline_mode<synchronous>, transform_indices = @transform_3, window_bounds = array<i64: 128, 128>}, {pipeline_mode = #tpu.pipeline_mode<synchronous>, transform_indices = @transform_4, window_bounds = array<i64: 1, 128>}, {pipeline_mode = #tpu.pipeline_mode<synchronous>, transform_indices = @transform_5, window_bounds = array<i64: 1, 128>}, {pipeline_mode = #tpu.pipeline_mode<synchronous>, transform_indices = @transform_6, window_bounds = array<i64: 128, 128>}]} {
    %c0 = arith.constant 0 : index
    %c0_0 = arith.constant 0 : index
    %0 = vector.load %arg2[%c0, %c0_0] : memref<128x128xbf16, #tpu.memory_space<vmem>>, vector<128x128xbf16>
    %c0_1 = arith.constant 0 : index
    %c0_2 = arith.constant 0 : index
    %1 = vector.load %arg3[%c0_1, %c0_2] : memref<128x128xbf16, #tpu.memory_space<vmem>>, vector<128x128xbf16>
    %cst = arith.constant dense<0.000000e+00> : vector<128x128xf32>
    %2 = tpu.matmul %0, %1, %cst {dimension_numbers = #tpu.dot_dimension_numbers<[1], [0], [0], [1], [0, 0, 1, 1], [], []>} : vector<128x128xbf16>, vector<128x128xbf16>, vector<128x128xf32> -> vector<128x128xf32>
    %3 = arith.truncf %2 : vector<128x128xf32> to vector<128x128xbf16>
    %c0_3 = arith.constant 0 : index
    %c0_4 = arith.constant 0 : index
    %4 = vector.load %arg8[%c0_3, %c0_4] : memref<128x128xbf16, #tpu.memory_space<vmem>>, vector<128x128xbf16>
    tpu.vector_store %arg8[%c0_3, %c0_4], %3 {strides = array<i32>} : memref<128x128xbf16, #tpu.memory_space<vmem>>, vector<128x128xbf16>,
    %c0_5 = arith.constant 0 : index
    %c0_6 = arith.constant 0 : index
    %5 = vector.load %arg1[%c0_5, %c0_6] : memref<128x128xbf16, #tpu.memory_space<vmem>>, vector<128x128xbf16>
    %c0_7 = arith.constant 0 : index
    %c0_8 = arith.constant 0 : index
    %6 = vector.load %arg8[%c0_7, %c0_8] : memref<128x128xbf16, #tpu.memory_space<vmem>>, vector<128x128xbf16>
    %cst_9 = arith.constant dense<0.000000e+00> : vector<128x128xf32>
    %7 = tpu.matmul %5, %6, %cst_9 {dimension_numbers = #tpu.dot_dimension_numbers<[1], [0], [0], [1], [0, 0, 1, 1], [], []>} : vector<128x128xbf16>, vector<128x128xbf16>, vector<128x128xf32> -> vector<128x128xf32>
    %8 = arith.truncf %7 : vector<128x128xf32> to vector<128x128xbf16>
    %c0_10 = arith.constant 0 : index
    %c0_11 = arith.constant 0 : index
    %9 = vector.load %arg9[%c0_10, %c0_11] : memref<128x128xbf16, #tpu.memory_space<vmem>>, vector<128x128xbf16>
    tpu.vector_store %arg9[%c0_10, %c0_11], %8 {strides = array<i32>} : memref<128x128xbf16, #tpu.memory_space<vmem>>, vector<128x128xbf16>,
    %c0_12 = arith.constant 0 : index
    %c0_13 = arith.constant 0 : index
    %10 = vector.load %arg1[%c0_12, %c0_13] : memref<128x128xbf16, #tpu.memory_space<vmem>>, vector<128x128xbf16>
    %c0_14 = arith.constant 0 : index
    %c0_15 = arith.constant 0 : index
    %11 = vector.load %arg9[%c0_14, %c0_15] : memref<128x128xbf16, #tpu.memory_space<vmem>>, vector<128x128xbf16>
    %cst_16 = arith.constant dense<0.000000e+00> : vector<128x128xf32>
    %12 = tpu.matmul %10, %11, %cst_16 {dimension_numbers = #tpu.dot_dimension_numbers<[1], [0], [0], [1], [0, 0, 1, 1], [], []>} : vector<128x128xbf16>, vector<128x128xbf16>, vector<128x128xf32> -> vector<128x128xf32>
    %c0_17 = arith.constant 0 : index
    %c0_18 = arith.constant 0 : index
    %13 = vector.load %arg5[%c0_17, %c0_18] : memref<1x128xf32, #tpu.memory_space<vmem>>, vector<1x128xf32>
    %14 = vector.broadcast %13 : vector<1x128xf32> to vector<128x128xf32>
    %15 = arith.addf %12, %14 : vector<128x128xf32>
    %cst_19 = arith.constant 0.000000e+00 : f32
    %16 = vector.broadcast %cst_19 : f32 to vector<128x128xf32>
    %17 = arith.maximumf %15, %16 : vector<128x128xf32>
    %18 = arith.truncf %17 : vector<128x128xf32> to vector<128x128xbf16>
    %c0_20 = arith.constant 0 : index
    %c0_21 = arith.constant 0 : index
    %19 = vector.load %arg4[%c0_20, %c0_21] : memref<128x128xbf16, #tpu.memory_space<vmem>>, vector<128x128xbf16>
    %cst_22 = arith.constant dense<0.000000e+00> : vector<128x128xf32>
    %20 = tpu.matmul %18, %19, %cst_22 {dimension_numbers = #tpu.dot_dimension_numbers<[1], [0], [0], [1], [0, 0, 1, 1], [], []>} : vector<128x128xbf16>, vector<128x128xbf16>, vector<128x128xf32> -> vector<128x128xf32>
    %21 = arith.truncf %20 : vector<128x128xf32> to vector<128x128xbf16>
    %c0_23 = arith.constant 0 : index
    %c0_24 = arith.constant 0 : index
    %22 = vector.load %arg9[%c0_23, %c0_24] : memref<128x128xbf16, #tpu.memory_space<vmem>>, vector<128x128xbf16>
    tpu.vector_store %arg9[%c0_23, %c0_24], %21 {strides = array<i32>} : memref<128x128xbf16, #tpu.memory_space<vmem>>, vector<128x128xbf16>,
    %c0_25 = arith.constant 0 : index
    %c0_26 = arith.constant 0 : index
    %23 = vector.load %arg1[%c0_25, %c0_26] : memref<128x128xbf16, #tpu.memory_space<vmem>>, vector<128x128xbf16>
    %c0_27 = arith.constant 0 : index
    %c0_28 = arith.constant 0 : index
    %24 = vector.load %arg9[%c0_27, %c0_28] : memref<128x128xbf16, #tpu.memory_space<vmem>>, vector<128x128xbf16>
    %cst_29 = arith.constant dense<0.000000e+00> : vector<128x128xf32>
    %25 = tpu.matmul %23, %24, %cst_29 {dimension_numbers = #tpu.dot_dimension_numbers<[1], [0], [0], [1], [0, 0, 1, 1], [], []>} : vector<128x128xbf16>, vector<128x128xbf16>, vector<128x128xf32> -> vector<128x128xf32>
    %26 = arith.truncf %25 : vector<128x128xf32> to vector<128x128xbf16>
    %c0_30 = arith.constant 0 : index
    %c0_31 = arith.constant 0 : index
    %27 = vector.load %arg8[%c0_30, %c0_31] : memref<128x128xbf16, #tpu.memory_space<vmem>>, vector<128x128xbf16>
    tpu.vector_store %arg8[%c0_30, %c0_31], %26 {strides = array<i32>} : memref<128x128xbf16, #tpu.memory_space<vmem>>, vector<128x128xbf16>,
    %c0_32 = arith.constant 0 : index
    %c0_33 = arith.constant 0 : index
    %28 = vector.load %arg1[%c0_32, %c0_33] : memref<128x128xbf16, #tpu.memory_space<vmem>>, vector<128x128xbf16>
    %c0_34 = arith.constant 0 : index
    %c0_35 = arith.constant 0 : index
    %29 = vector.load %arg8[%c0_34, %c0_35] : memref<128x128xbf16, #tpu.memory_space<vmem>>, vector<128x128xbf16>
    %cst_36 = arith.constant dense<0.000000e+00> : vector<128x128xf32>
    %30 = tpu.matmul %28, %29, %cst_36 {dimension_numbers = #tpu.dot_dimension_numbers<[1], [0], [0], [1], [0, 0, 1, 1], [], []>} : vector<128x128xbf16>, vector<128x128xbf16>, vector<128x128xf32> -> vector<128x128xf32>
    %c0_37 = arith.constant 0 : index
    %c0_38 = arith.constant 0 : index
    %31 = vector.load %arg6[%c0_37, %c0_38] : memref<1x128xf32, #tpu.memory_space<vmem>>, vector<1x128xf32>
    %32 = vector.broadcast %31 : vector<1x128xf32> to vector<128x128xf32>
    %33 = arith.addf %30, %32 : vector<128x128xf32>
    %c0_39 = arith.constant 0 : index
    %c0_40 = arith.constant 0 : index
    %34 = vector.load %arg7[%c0_39, %c0_40] : memref<128x128xf32, #tpu.memory_space<vmem>>, vector<128x128xf32>
    tpu.vector_store %arg7[%c0_39, %c0_40], %33 {strides = array<i32>} : memref<128x128xf32, #tpu.memory_space<vmem>>, vector<128x128xf32>,
    return
  }
  func.func @transform_0(%arg0: i32) -> (i32, i32) {
    %c0_i32 = arith.constant 0 : i32
    %c0_i32_0 = arith.constant 0 : i32
    %c0_i32_1 = arith.constant 0 : i32
    return %c0_i32, %c0_i32_0 : i32, i32
  }
  func.func @transform_1(%arg0: i32) -> (i32, i32) {
    %c0_i32 = arith.constant 0 : i32
    %c0_i32_0 = arith.constant 0 : i32
    %c0_i32_1 = arith.constant 0 : i32
    return %c0_i32, %c0_i32_0 : i32, i32
  }
  func.func @transform_2(%arg0: i32) -> (i32, i32) {
    %c0_i32 = arith.constant 0 : i32
    %c0_i32_0 = arith.constant 0 : i32
    %c0_i32_1 = arith.constant 0 : i32
    return %c0_i32, %c0_i32_0 : i32, i32
  }
  func.func @transform_3(%arg0: i32) -> (i32, i32) {
    %c0_i32 = arith.constant 0 : i32
    %c0_i32_0 = arith.constant 0 : i32
    %c0_i32_1 = arith.constant 0 : i32
    return %c0_i32, %c0_i32_0 : i32, i32
  }
  func.func @transform_4(%arg0: i32) -> (i32, i32) {
    %c0_i32 = arith.constant 0 : i32
    %c0_i32_0 = arith.constant 0 : i32
    %c0_i32_1 = arith.constant 0 : i32
    return %c0_i32, %c0_i32_0 : i32, i32
  }
  func.func @transform_5(%arg0: i32) -> (i32, i32) {
    %c0_i32 = arith.constant 0 : i32
    %c0_i32_0 = arith.constant 0 : i32
    %c0_i32_1 = arith.constant 0 : i32
    return %c0_i32, %c0_i32_0 : i32, i32
  }
  func.func @transform_6(%arg0: i32) -> (i32, i32) {
    %c0_i32 = arith.constant 0 : i32
    %c0_i32_0 = arith.constant 0 : i32
    %c0_i32_1 = arith.constant 0 : i32
    return %c0_i32, %c0_i32_0 : i32, i32
  }
}

</mosaic_0001>

<bundles_post_ra>
// kernel: deep_linear_forward.1
= control target key start
LH: loop header
LB: loop body
LE: loop exit
PB: predicated region body
PF: predicated region fallthrough
CT: control target
= control target key end

     0   :  { %s1867_s2 = inlined_call_operand.vmem [shape: bf16[128,128], index: 2, kind: input, shape index: {}]   ;;  %s1868_s1 = inlined_call_operand.vmem [shape: bf16[128,128], index: 1, kind: input, shape index: {}]   ;;  %s1869_s0 = inlined_call_operand.vmem [shape: bf16[128,128], index: 0, kind: input, shape index: {}]   ;;  %s1870_s3 = inlined_call_operand.vmem [shape: bf16[128,128], index: 3, kind: input, shape index: {}]   ;;  %s1871_s4 = inlined_call_operand.vmem [shape: f32[1,128], index: 4, kind: input, shape index: {}]   ;;  %s1872_s5 = inlined_call_operand.vmem [shape: f32[1,128], index: 5, kind: input, shape index: {}]   ;;  %s1873_s6 = inlined_call_operand.vmem [shape: f32[128,128], index: 6, kind: output, shape index: {}]  }
   0x1   :  { %v1554_v0 = vld [vmem:[%s1867_s2] sm:$0xff]   ;;  %v1555_v1 = vld [vmem:[%s1867_s2 + $0x8] sm:$0xff]   ;;  %v1556_v2 = vld [vmem:[%s1867_s2 + $0x10] sm:$0xff]  }
   0x2   :  { %1362 = vmatprep.subr.bf16.mxu0 %v1554_v0  ;;  %v1557_v3 = vld [vmem:[%s1867_s2 + $0x18] sm:$0xff]   ;;  %v1562_v4 = vld [vmem:[%s1868_s1] sm:$0xff]   ;;  %v1559_v6 = vld [vmem:[%s1867_s2 + $0x28] sm:$0xff]  }
   0x3   :  { %1363 = vmatpush3.bf16.msra.mxu0 %v1554_v0  ;;  %1378 = vmatprep.mubr.bf16.mxu0 %v1562_v4  ;;  %v1558_v5 = vld [vmem:[%s1867_s2 + $0x20] sm:$0xff]   ;;  %v1560_v7 = vld [vmem:[%s1867_s2 + $0x30] sm:$0xff]   ;;  %v1561_v8 = vld [vmem:[%s1867_s2 + $0x38] sm:$0xff]  }
   0x4   :  { %1364 = vmatprep.subr.bf16.mxu0 %v1555_v1  ;;  %v1563_v9 = vld [vmem:[%s1868_s1 + $0x8] sm:$0xff]   ;;  %v1564_v10 = vld [vmem:[%s1868_s1 + $0x10] sm:$0xff]   ;;  %v1565_v11 = vld [vmem:[%s1868_s1 + $0x18] sm:$0xff]  }
   0x5   :  { %v1566_v12 = vld [vmem:[%s1868_s1 + $0x20] sm:$0xff]   ;;  %v1567_v13 = vld [vmem:[%s1868_s1 + $0x28] sm:$0xff]   ;;  %v1568_v14 = vld [vmem:[%s1868_s1 + $0x30] sm:$0xff]  }
   0x6   :  { %v1569_v15 = vld [vmem:[%s1868_s1 + $0x38] sm:$0xff]   ;;  %v1570_v16 = vld [vmem:[%s1869_s0] sm:$0xff]   ;;  %v1571_v41 = vld [vmem:[%s1869_s0 + $0x8] sm:$0xff]  }
   0x7   :  { %1365 = vmatpush3.bf16.msra.mxu0 %v1555_v1  ;;  %1410 = vmatprep.mubr.bf16.mxu1 %v1570_v16  ;;  %v1572_v42 = vld [vmem:[%s1869_s0 + $0x10] sm:$0xff]   ;;  %v1573_v43 = vld [vmem:[%s1869_s0 + $0x18] sm:$0xff]   ;;  %v1574_v44 = vld [vmem:[%s1869_s0 + $0x20] sm:$0xff]  }
   0x8   :  { %1366 = vmatprep.subr.bf16.mxu0 %v1556_v2  ;;  %v1575_v45 = vld [vmem:[%s1869_s0 + $0x28] sm:$0xff]   ;;  %v1576_v46 = vld [vmem:[%s1869_s0 + $0x30] sm:$0xff]   ;;  %v1577_v47 = vld [vmem:[%s1869_s0 + $0x38] sm:$0xff]  }
   0x9   :  { %v1578_v48 = vld [vmem:[%s1869_s0] sm:$0xff]   ;;  %v1587_v50 = vld [vmem:[%s1870_s3 + $0x8] sm:$0xff]   ;;  %v1588_v51 = vld [vmem:[%s1870_s3 + $0x10] sm:$0xff]  }
   0xa   :  { %v1586_v49 = vld [vmem:[%s1870_s3] sm:$0xff]   ;;  %v1589_v52 = vld [vmem:[%s1870_s3 + $0x18] sm:$0xff]   ;;  %v1591_v54 = vld [vmem:[%s1870_s3 + $0x28] sm:$0xff]  }
   0xb   :  { %1367 = vmatpush3.bf16.msra.mxu0 %v1556_v2  ;;  %v1590_v53 = vld [vmem:[%s1870_s3 + $0x20] sm:$0xff]   ;;  %v1580_v16 = vld [vmem:[%s1869_s0 + $0x10] sm:$0xff]  }
   0xc   :  { %1368 = vmatprep.subr.bf16.mxu0 %v1557_v3 }
   0xf   :  { %1369 = vmatpush3.bf16.msra.mxu0 %v1557_v3 }
  0x10   :  { %1370 = vmatprep.subr.bf16.mxu0 %v1558_v5 }
  0x13   :  { %1371 = vmatpush3.bf16.msra.mxu0 %v1558_v5 }
  0x14   :  { %1372 = vmatprep.subr.bf16.mxu0 %v1559_v6 }
  0x17   :  { %1373 = vmatpush3.bf16.msra.mxu0 %v1559_v6 }
  0x18   :  { %1374 = vmatprep.subr.bf16.mxu0 %v1560_v7 }
  0x1b   :  { %1375 = vmatpush3.bf16.msra.mxu0 %v1560_v7 }
  0x1c   :  { %1376 = vmatprep.subr.bf16.mxu0 %v1561_v8 }
  0x1f   :  { %1377 = vmatpush3.bf16.msra.mxu0 %v1561_v8 }
  0x22   :  { %1379 = vmatmul.mubr.bf16.vlgmr.msra.gmra.mrb[0].mxu0 %v1563_v9 }
  0x23   :  { %1382 = vmatprep.mubr.bf16.mxu0 %v1564_v10 }
  0x2a   :  { %1383 = vmatmul.mubr.bf16.gmra.mrb[4].mxu0 %v1565_v11 }
  0x2b   :  { %1386 = vmatprep.mubr.bf16.mxu0 %v1566_v12 }
  0x32   :  { %1387 = vmatmul.mubr.bf16.gmra.mrb[8].mxu0 %v1567_v13 }
  0x33   :  { %1390 = vmatprep.mubr.bf16.mxu0 %v1568_v14 }
  0x3a   :  { %1391 = vmatmul.mubr.bf16.gmra.mrb[12].mxu0 %v1569_v15  ;;  %v1579_v15 = vld [vmem:[%s1869_s0 + $0x8] sm:$0xff]  }
  0x3b   :  { %1442 = vmatprep.mubr.bf16.mxu0 %v1578_v48 }
  0xf5   :  { %v1380_v17 = vpop.f32.mrb[0].mxu0 }
  0xf6   :  { %v186_v18 = vpop.f32.mrb[1].mxu0 }
  0xf7   :  { %v1381_v19 = vpop.f32.mrb[2].mxu0 }
  0xf8   :  { %v250_v20 = vpack.c.bf16 %v1381_v19, %v1380_v17  ;;  %v189_v21 = vpop.f32.mrb[3].mxu0  ;;  %v1581_v17 = vld [vmem:[%s1869_s0 + $0x18] sm:$0xff]   ;;  %v1583_v19 = vld [vmem:[%s1869_s0 + $0x28] sm:$0xff]  }
  0xf9   :  { %v249_v22 = vpack.c.bf16 %v189_v21, %v186_v18  ;;  %v1582_v18 = vld [vmem:[%s1869_s0 + $0x20] sm:$0xff]   ;;  %v1585_v21 = vld [vmem:[%s1869_s0 + $0x38] sm:$0xff]  }
  0xfb   :  { %1394 = vmatprep.subr.bf16.mxu1 %v249_v22 }
  0xfc   :  { %1395 = vmatpush3.bf16.msra.mxu1 %v249_v22  ;;  %v1592_v22 = vld [vmem:[%s1870_s3 + $0x30] sm:$0xff]  }
  0xfd   :  { %v1384_v23 = vpop.f32.mrb[4].mxu0  ;;  %1396 = vmatprep.subr.bf16.mxu1 %v250_v20 }
  0xfe   :  { %v202_v24 = vpop.f32.mrb[5].mxu0 }
  0xff   :  { %v1385_v25 = vpop.f32.mrb[6].mxu0 }
 0x100   :  { %v252_v26 = vpack.c.bf16 %v1385_v25, %v1384_v23  ;;  %v205_v27 = vpop.f32.mrb[7].mxu0  ;;  %1397 = vmatpush3.bf16.msra.mxu1 %v250_v20  ;;  %v1584_v20 = vld [vmem:[%s1869_s0 + $0x30] sm:$0xff]   ;;  %v1593_v23 = vld [vmem:[%s1870_s3 + $0x38] sm:$0xff]  }
 0x101   :  { %v251_v28 = vpack.c.bf16 %v205_v27, %v202_v24  ;;  %v1232_v24 = vld [vmem:[%s1871_s4] ss:$0 sm:$0xff] }
 0x103   :  { %1398 = vmatprep.subr.bf16.mxu1 %v251_v28 }
 0x104   :  { %1399 = vmatpush3.bf16.msra.mxu1 %v251_v28 }
 0x105   :  { %v1388_v29 = vpop.f32.mrb[8].mxu0  ;;  %1400 = vmatprep.subr.bf16.mxu1 %v252_v26 }
 0x106   :  { %v218_v30 = vpop.f32.mrb[9].mxu0 }
 0x107   :  { %v1389_v31 = vpop.f32.mrb[10].mxu0 }
 0x108   :  { %v254_v32 = vpack.c.bf16 %v1389_v31, %v1388_v29  ;;  %v221_v33 = vpop.f32.mrb[11].mxu0  ;;  %1401 = vmatpush3.bf16.msra.mxu1 %v252_v26 }
 0x109   :  { %v253_v34 = vpack.c.bf16 %v221_v33, %v218_v30 }
 0x10b   :  { %1402 = vmatprep.subr.bf16.mxu1 %v253_v34 }
 0x10c   :  { %1403 = vmatpush3.bf16.msra.mxu1 %v253_v34 }
 0x10d   :  { %v1392_v35 = vpop.f32.mrb[12].mxu0  ;;  %1404 = vmatprep.subr.bf16.mxu1 %v254_v32 }
 0x10e   :  { %v234_v36 = vpop.f32.mrb[13].mxu0 }
 0x10f   :  { %v1393_v37 = vpop.f32.mrb[14].mxu0 }
 0x110   :  { %v256_v38 = vpack.c.bf16 %v1393_v37, %v1392_v35  ;;  %v237_v39 = vpop.f32.mrb[15].mxu0  ;;  %1405 = vmatpush3.bf16.msra.mxu1 %v254_v32 }
 0x111   :  { %v255_v40 = vpack.c.bf16 %v237_v39, %v234_v36 }
 0x113   :  { %1406 = vmatprep.subr.bf16.mxu1 %v255_v40 }
 0x114   :  { %1407 = vmatpush3.bf16.msra.mxu1 %v255_v40 }
 0x115   :  { %1408 = vmatprep.subr.bf16.mxu1 %v256_v38 }
 0x118   :  { %1409 = vmatpush3.bf16.msra.mxu1 %v256_v38 }
 0x119   :  { %1458 = vmatprep.subr.bf16.mxu1 %v1586_v49 }
 0x11b   :  { %1411 = vmatmul.mubr.bf16.vlgmr.msra.gmra.mrb[0].mxu1 %v1571_v41 }
 0x11c   :  { %1414 = vmatprep.mubr.bf16.mxu1 %v1572_v42  ;;  %1459 = vmatpush3.bf16.msra.mxu1 %v1586_v49 }
 0x11d   :  { %1460 = vmatprep.subr.bf16.mxu1 %v1587_v50 }
 0x120   :  { %1461 = vmatpush3.bf16.msra.mxu1 %v1587_v50 }
 0x121   :  { %1462 = vmatprep.subr.bf16.mxu1 %v1588_v51 }
 0x123   :  { %1415 = vmatmul.mubr.bf16.gmra.mrb[4].mxu1 %v1573_v43 }
 0x124   :  { %1418 = vmatprep.mubr.bf16.mxu1 %v1574_v44  ;;  %1463 = vmatpush3.bf16.msra.mxu1 %v1588_v51 }
 0x125   :  { %1464 = vmatprep.subr.bf16.mxu1 %v1589_v52 }
 0x128   :  { %1465 = vmatpush3.bf16.msra.mxu1 %v1589_v52 }
 0x129   :  { %1466 = vmatprep.subr.bf16.mxu1 %v1590_v53 }
 0x12b   :  { %1419 = vmatmul.mubr.bf16.gmra.mrb[8].mxu1 %v1575_v45 }
 0x12c   :  { %1422 = vmatprep.mubr.bf16.mxu1 %v1576_v46  ;;  %1467 = vmatpush3.bf16.msra.mxu1 %v1590_v53 }
 0x12d   :  { %1468 = vmatprep.subr.bf16.mxu1 %v1591_v54 }
 0x130   :  { %1469 = vmatpush3.bf16.msra.mxu1 %v1591_v54 }
 0x131   :  { %1470 = vmatprep.subr.bf16.mxu1 %v1592_v22 }
 0x133   :  { %1423 = vmatmul.mubr.bf16.gmra.mrb[12].mxu1 %v1577_v47 }
 0x134   :  { %1471 = vmatpush3.bf16.msra.mxu1 %v1592_v22 }
 0x135   :  { %1472 = vmatprep.subr.bf16.mxu1 %v1593_v23 }
 0x138   :  { %1473 = vmatpush3.bf16.msra.mxu1 %v1593_v23 }
 0x1ee   :  { %v1412_v55 = vpop.f32.mrb[0].mxu1 }
 0x1ef   :  { %v371_v56 = vpop.f32.mrb[1].mxu1 }
 0x1f0   :  { %v1413_v57 = vpop.f32.mrb[2].mxu1 }
 0x1f1   :  { %v435_v58 = vpack.c.bf16 %v1413_v57, %v1412_v55  ;;  %v374_v59 = vpop.f32.mrb[3].mxu1 }
 0x1f2   :  { %v434_v60 = vpack.c.bf16 %v374_v59, %v371_v56 }
 0x1f4   :  { %1426 = vmatprep.subr.bf16.mxu0 %v434_v60 }
 0x1f5   :  { %1427 = vmatpush3.bf16.msra.mxu0 %v434_v60 }
 0x1f6   :  { %v1416_v61 = vpop.f32.mrb[4].mxu1  ;;  %1428 = vmatprep.subr.bf16.mxu0 %v435_v58 }
 0x1f7   :  { %v387_v62 = vpop.f32.mrb[5].mxu1 }
 0x1f8   :  { %v1417_v63 = vpop.f32.mrb[6].mxu1 }
 0x1f9   :  { %v437_v0 = vpack.c.bf16 %v1417_v63, %v1416_v61  ;;  %v390_v1 = vpop.f32.mrb[7].mxu1  ;;  %1429 = vmatpush3.bf16.msra.mxu0 %v435_v58 }
 0x1fa   :  { %v436_v2 = vpack.c.bf16 %v390_v1, %v387_v62 }
 0x1fc   :  { %1430 = vmatprep.subr.bf16.mxu0 %v436_v2 }
 0x1fd   :  { %1431 = vmatpush3.bf16.msra.mxu0 %v436_v2 }
 0x1fe   :  { %v1420_v3 = vpop.f32.mrb[8].mxu1  ;;  %1432 = vmatprep.subr.bf16.mxu0 %v437_v0 }
 0x1ff   :  { %v403_v4 = vpop.f32.mrb[9].mxu1 }
 0x200   :  { %v1421_v5 = vpop.f32.mrb[10].mxu1 }
 0x201   :  { %v439_v6 = vpack.c.bf16 %v1421_v5, %v1420_v3  ;;  %v406_v7 = vpop.f32.mrb[11].mxu1  ;;  %1433 = vmatpush3.bf16.msra.mxu0 %v437_v0 }
 0x202   :  { %v438_v8 = vpack.c.bf16 %v406_v7, %v403_v4 }
 0x204   :  { %1434 = vmatprep.subr.bf16.mxu0 %v438_v8 }
 0x205   :  { %1435 = vmatpush3.bf16.msra.mxu0 %v438_v8 }
 0x206   :  { %v1424_v9 = vpop.f32.mrb[12].mxu1  ;;  %1436 = vmatprep.subr.bf16.mxu0 %v439_v6 }
 0x207   :  { %v419_v10 = vpop.f32.mrb[13].mxu1 }
 0x208   :  { %v1425_v11 = vpop.f32.mrb[14].mxu1 }
 0x209   :  { %v441_v12 = vpack.c.bf16 %v1425_v11, %v1424_v9  ;;  %v422_v13 = vpop.f32.mrb[15].mxu1  ;;  %1437 = vmatpush3.bf16.msra.mxu0 %v439_v6 }
 0x20a   :  { %v440_v14 = vpack.c.bf16 %v422_v13, %v419_v10 }
 0x20c   :  { %1438 = vmatprep.subr.bf16.mxu0 %v440_v14 }
 0x20d   :  { %1439 = vmatpush3.bf16.msra.mxu0 %v440_v14 }
 0x20e   :  { %1440 = vmatprep.subr.bf16.mxu0 %v441_v12 }
 0x211   :  { %1441 = vmatpush3.bf16.msra.mxu0 %v441_v12 }
 0x214   :  { %1443 = vmatmul.mubr.bf16.vlgmr.msra.gmra.mrb[16].mxu0 %v1579_v15 }
 0x215   :  { %1446 = vmatprep.mubr.bf16.mxu0 %v1580_v16 }
 0x21c   :  { %1447 = vmatmul.mubr.bf16.gmra.mrb[20].mxu0 %v1581_v17  ;;  %v1594_v17 = vld [vmem:[%s1869_s0] sm:$0xff]  }
 0x21d   :  { %1450 = vmatprep.mubr.bf16.mxu0 %v1582_v18 }
 0x224   :  { %1451 = vmatmul.mubr.bf16.gmra.mrb[24].mxu0 %v1583_v19 }
 0x225   :  { %1454 = vmatprep.mubr.bf16.mxu0 %v1584_v20 }
 0x22c   :  { %1455 = vmatmul.mubr.bf16.gmra.mrb[28].mxu0 %v1585_v21 }
 0x22d   :  { %1506 = vmatprep.mubr.bf16.mxu0 %v1594_v17  ;;  %v1257_v17 = vld [vmem:[%s1872_s5] ss:$0 sm:$0xff] }
 0x2e7   :  { %v1444_v25 = vpop.f32.mrb[16].mxu0 }
 0x2e8   :  { %v572_v26 = vadd.f32 %v1444_v25, %v1232_v24  ;;  %v563_v27 = vpop.f32.mrb[17].mxu0 }
 0x2e9   :  { %v564_v28 = vadd.f32 %v1232_v24, %v563_v27  ;;  %v1445_v29 = vpop.f32.mrb[18].mxu0 }
 0x2ea   :  { %v575_v30 = vadd.f32 %v1445_v29, %v1232_v24  ;;  %v566_v31 = vpop.f32.mrb[19].mxu0  ;;  %v628_v33 = vmax.f32 %v572_v26, 0.0 }
 0x2eb   :  { %v567_v32 = vadd.f32 %v1232_v24, %v566_v31  ;;  %v626_v35 = vmax.f32 %v564_v28, 0.0 }
 0x2ec   :  { %v629_v34 = vmax.f32 %v575_v30, 0.0 }
 0x2ed   :  { %v627_v36 = vmax.f32 %v567_v32, 0.0 }
 0x2ee   :  { %v643_v37 = vpack.c.bf16 %v629_v34, %v628_v33 }
 0x2ef   :  { %v642_v38 = vpack.c.bf16 %v627_v36, %v626_v35  ;;  %v1448_v39 = vpop.f32.mrb[20].mxu0 }
 0x2f0   :  { %v588_v40 = vadd.f32 %v1448_v39, %v1232_v24  ;;  %v579_v41 = vpop.f32.mrb[21].mxu0 }
 0x2f1   :  { %v580_v42 = vadd.f32 %v1232_v24, %v579_v41  ;;  %v1449_v43 = vpop.f32.mrb[22].mxu0  ;;  %1474 = vmatprep.mubr.bf16.mxu1 %v642_v38 }
 0x2f2   :  { %v591_v44 = vadd.f32 %v1449_v43, %v1232_v24  ;;  %v582_v45 = vpop.f32.mrb[23].mxu0  ;;  %1475 = vmatmul.mubr.bf16.vlgmr.msra.gmra.mrb[16].mxu1 %v643_v37  ;;  %v632_v47 = vmax.f32 %v588_v40, 0.0  ;;  %v1596_v43 = vld [vmem:[%s1869_s0 + $0x10] sm:$0xff]  }
 0x2f3   :  { %v583_v46 = vadd.f32 %v1232_v24, %v582_v45  ;;  %v630_v49 = vmax.f32 %v580_v42, 0.0  ;;  %v1595_v42 = vld [vmem:[%s1869_s0 + $0x8] sm:$0xff]   ;;  %v1598_v45 = vld [vmem:[%s1869_s0 + $0x20] sm:$0xff]  }
 0x2f4   :  { %v633_v48 = vmax.f32 %v591_v44, 0.0  ;;  %v1597_v44 = vld [vmem:[%s1869_s0 + $0x18] sm:$0xff]  }
 0x2f5   :  { %v631_v50 = vmax.f32 %v583_v46, 0.0  ;;  %v1599_v46 = vld [vmem:[%s1869_s0 + $0x28] sm:$0xff]  }
 0x2f6   :  { %v645_v51 = vpack.c.bf16 %v633_v48, %v632_v47  ;;  %v1600_v47 = vld [vmem:[%s1869_s0 + $0x30] sm:$0xff]   ;;  %v1601_v48 = vld [vmem:[%s1869_s0 + $0x38] sm:$0xff]  }
 0x2f7   :  { %v644_v52 = vpack.c.bf16 %v631_v50, %v630_v49  ;;  %v1452_v53 = vpop.f32.mrb[24].mxu0  ;;  %v1602_v49 = vld [vmem:[%s1869_s0] sm:$0xff]  }
 0x2f8   :  { %v604_v54 = vadd.f32 %v1452_v53, %v1232_v24  ;;  %v595_v55 = vpop.f32.mrb[25].mxu0 }
 0x2f9   :  { %v596_v56 = vadd.f32 %v1232_v24, %v595_v55  ;;  %v1453_v57 = vpop.f32.mrb[26].mxu0  ;;  %1478 = vmatprep.mubr.bf16.mxu1 %v644_v52 }
 0x2fa   :  { %v607_v58 = vadd.f32 %v1453_v57, %v1232_v24  ;;  %v598_v59 = vpop.f32.mrb[27].mxu0  ;;  %1479 = vmatmul.mubr.bf16.gmra.mrb[20].mxu1 %v645_v51  ;;  %v636_v61 = vmax.f32 %v604_v54, 0.0 }
 0x2fb   :  { %v599_v60 = vadd.f32 %v1232_v24, %v598_v59  ;;  %v634_v63 = vmax.f32 %v596_v56, 0.0 }
 0x2fc   :  { %v637_v62 = vmax.f32 %v607_v58, 0.0 }
 0x2fd   :  { %v635_v0 = vmax.f32 %v599_v60, 0.0 }
 0x2fe   :  { %v647_v1 = vpack.c.bf16 %v637_v62, %v636_v61 }
 0x2ff   :  { %v646_v2 = vpack.c.bf16 %v635_v0, %v634_v63  ;;  %v1456_v3 = vpop.f32.mrb[28].mxu0 }
 0x300   :  { %v620_v4 = vadd.f32 %v1456_v3, %v1232_v24  ;;  %v611_v5 = vpop.f32.mrb[29].mxu0 }
 0x301   :  { %v612_v6 = vadd.f32 %v1232_v24, %v611_v5  ;;  %v1457_v7 = vpop.f32.mrb[30].mxu0  ;;  %1482 = vmatprep.mubr.bf16.mxu1 %v646_v2 }
 0x302   :  { %v623_v8 = vadd.f32 %v1457_v7, %v1232_v24  ;;  %v614_v9 = vpop.f32.mrb[31].mxu0  ;;  %1483 = vmatmul.mubr.bf16.gmra.mrb[24].mxu1 %v647_v1  ;;  %v640_v11 = vmax.f32 %v620_v4, 0.0 }
 0x303   :  { %v615_v10 = vadd.f32 %v1232_v24, %v614_v9  ;;  %v638_v13 = vmax.f32 %v612_v6, 0.0 }
 0x304   :  { %v641_v12 = vmax.f32 %v623_v8, 0.0 }
 0x305   :  { %v639_v14 = vmax.f32 %v615_v10, 0.0  ;;  %v1603_v10 = vld [vmem:[%s1869_s0 + $0x8] sm:$0xff]  }
 0x306   :  { %v649_v15 = vpack.c.bf16 %v641_v12, %v640_v11  ;;  %v1604_v11 = vld [vmem:[%s1869_s0 + $0x10] sm:$0xff]   ;;  %v1605_v12 = vld [vmem:[%s1869_s0 + $0x18] sm:$0xff]  }
 0x307   :  { %v648_v16 = vpack.c.bf16 %v639_v14, %v638_v13  ;;  %v1606_v13 = vld [vmem:[%s1869_s0 + $0x20] sm:$0xff]   ;;  %v1607_v14 = vld [vmem:[%s1869_s0 + $0x28] sm:$0xff]  }
 0x309   :  { %1486 = vmatprep.mubr.bf16.mxu1 %v648_v16  ;;  %v1609_v16 = vld [vmem:[%s1869_s0 + $0x38] sm:$0xff]  }
 0x30a   :  { %1487 = vmatmul.mubr.bf16.gmra.mrb[28].mxu1 %v649_v15  ;;  %v1608_v15 = vld [vmem:[%s1869_s0 + $0x30] sm:$0xff]  }
 0x30b   :  { %1538 = vmatprep.mubr.bf16.mxu1 %v1602_v49 }
 0x3c5   :  { %v1476_v18 = vpop.f32.mrb[16].mxu1 }
 0x3c6   :  { %v748_v19 = vpop.f32.mrb[17].mxu1 }
 0x3c7   :  { %v1477_v20 = vpop.f32.mrb[18].mxu1 }
 0x3c8   :  { %v812_v21 = vpack.c.bf16 %v1477_v20, %v1476_v18  ;;  %v751_v22 = vpop.f32.mrb[19].mxu1 }
 0x3c9   :  { %v811_v23 = vpack.c.bf16 %v751_v22, %v748_v19 }
 0x3cb   :  { %1490 = vmatprep.subr.bf16.mxu0 %v811_v23 }
 0x3cc   :  { %1491 = vmatpush3.bf16.msra.mxu0 %v811_v23 }
 0x3cd   :  { %v1480_v24 = vpop.f32.mrb[20].mxu1  ;;  %1492 = vmatprep.subr.bf16.mxu0 %v812_v21 }
 0x3ce   :  { %v764_v25 = vpop.f32.mrb[21].mxu1 }
 0x3cf   :  { %v1481_v26 = vpop.f32.mrb[22].mxu1 }
 0x3d0   :  { %v814_v27 = vpack.c.bf16 %v1481_v26, %v1480_v24  ;;  %v767_v28 = vpop.f32.mrb[23].mxu1  ;;  %1493 = vmatpush3.bf16.msra.mxu0 %v812_v21 }
 0x3d1   :  { %v813_v29 = vpack.c.bf16 %v767_v28, %v764_v25 }
 0x3d3   :  { %1494 = vmatprep.subr.bf16.mxu0 %v813_v29 }
 0x3d4   :  { %1495 = vmatpush3.bf16.msra.mxu0 %v813_v29 }
 0x3d5   :  { %v1484_v30 = vpop.f32.mrb[24].mxu1  ;;  %1496 = vmatprep.subr.bf16.mxu0 %v814_v27 }
 0x3d6   :  { %v780_v31 = vpop.f32.mrb[25].mxu1 }
 0x3d7   :  { %v1485_v32 = vpop.f32.mrb[26].mxu1 }
 0x3d8   :  { %v816_v33 = vpack.c.bf16 %v1485_v32, %v1484_v30  ;;  %v783_v34 = vpop.f32.mrb[27].mxu1  ;;  %1497 = vmatpush3.bf16.msra.mxu0 %v814_v27 }
 0x3d9   :  { %v815_v35 = vpack.c.bf16 %v783_v34, %v780_v31 }
 0x3db   :  { %1498 = vmatprep.subr.bf16.mxu0 %v815_v35 }
 0x3dc   :  { %1499 = vmatpush3.bf16.msra.mxu0 %v815_v35 }
 0x3dd   :  { %v1488_v36 = vpop.f32.mrb[28].mxu1  ;;  %1500 = vmatprep.subr.bf16.mxu0 %v816_v33 }
 0x3de   :  { %v796_v37 = vpop.f32.mrb[29].mxu1 }
 0x3df   :  { %v1489_v38 = vpop.f32.mrb[30].mxu1 }
 0x3e0   :  { %v818_v39 = vpack.c.bf16 %v1489_v38, %v1488_v36  ;;  %v799_v40 = vpop.f32.mrb[31].mxu1  ;;  %1501 = vmatpush3.bf16.msra.mxu0 %v816_v33 }
 0x3e1   :  { %v817_v41 = vpack.c.bf16 %v799_v40, %v796_v37 }
 0x3e3   :  { %1502 = vmatprep.subr.bf16.mxu0 %v817_v41 }
 0x3e4   :  { %1503 = vmatpush3.bf16.msra.mxu0 %v817_v41 }
 0x3e5   :  { %1504 = vmatprep.subr.bf16.mxu0 %v818_v39 }
 0x3e8   :  { %1505 = vmatpush3.bf16.msra.mxu0 %v818_v39 }
 0x3eb   :  { %1507 = vmatmul.mubr.bf16.vlgmr.msra.gmra.mrb[32].mxu0 %v1595_v42 }
 0x3ec   :  { %1510 = vmatprep.mubr.bf16.mxu0 %v1596_v43 }
 0x3f3   :  { %1511 = vmatmul.mubr.bf16.gmra.mrb[36].mxu0 %v1597_v44 }
 0x3f4   :  { %1514 = vmatprep.mubr.bf16.mxu0 %v1598_v45 }
 0x3fb   :  { %1515 = vmatmul.mubr.bf16.gmra.mrb[40].mxu0 %v1599_v46 }
 0x3fc   :  { %1518 = vmatprep.mubr.bf16.mxu0 %v1600_v47 }
 0x403   :  { %1519 = vmatmul.mubr.bf16.gmra.mrb[44].mxu0 %v1601_v48 }
 0x4be   :  { %v1508_v50 = vpop.f32.mrb[32].mxu0 }
 0x4bf   :  { %v933_v51 = vpop.f32.mrb[33].mxu0 }
 0x4c0   :  { %v1509_v52 = vpop.f32.mrb[34].mxu0 }
 0x4c1   :  { %v997_v53 = vpack.c.bf16 %v1509_v52, %v1508_v50  ;;  %v936_v54 = vpop.f32.mrb[35].mxu0 }
 0x4c2   :  { %v996_v55 = vpack.c.bf16 %v936_v54, %v933_v51 }
 0x4c4   :  { %1522 = vmatprep.subr.bf16.mxu1 %v996_v55 }
 0x4c5   :  { %1523 = vmatpush3.bf16.msra.mxu1 %v996_v55 }
 0x4c6   :  { %v1512_v56 = vpop.f32.mrb[36].mxu0  ;;  %1524 = vmatprep.subr.bf16.mxu1 %v997_v53 }
 0x4c7   :  { %v949_v57 = vpop.f32.mrb[37].mxu0 }
 0x4c8   :  { %v1513_v58 = vpop.f32.mrb[38].mxu0 }
 0x4c9   :  { %v999_v59 = vpack.c.bf16 %v1513_v58, %v1512_v56  ;;  %v952_v60 = vpop.f32.mrb[39].mxu0  ;;  %1525 = vmatpush3.bf16.msra.mxu1 %v997_v53 }
 0x4ca   :  { %v998_v61 = vpack.c.bf16 %v952_v60, %v949_v57 }
 0x4cc   :  { %1526 = vmatprep.subr.bf16.mxu1 %v998_v61 }
 0x4cd   :  { %1527 = vmatpush3.bf16.msra.mxu1 %v998_v61 }
 0x4ce   :  { %v1516_v62 = vpop.f32.mrb[40].mxu0  ;;  %1528 = vmatprep.subr.bf16.mxu1 %v999_v59 }
 0x4cf   :  { %v965_v63 = vpop.f32.mrb[41].mxu0 }
 0x4d0   :  { %v1517_v0 = vpop.f32.mrb[42].mxu0 }
 0x4d1   :  { %v1001_v1 = vpack.c.bf16 %v1517_v0, %v1516_v62  ;;  %v968_v2 = vpop.f32.mrb[43].mxu0  ;;  %1529 = vmatpush3.bf16.msra.mxu1 %v999_v59 }
 0x4d2   :  { %v1000_v3 = vpack.c.bf16 %v968_v2, %v965_v63 }
 0x4d4   :  { %1530 = vmatprep.subr.bf16.mxu1 %v1000_v3 }
 0x4d5   :  { %1531 = vmatpush3.bf16.msra.mxu1 %v1000_v3 }
 0x4d6   :  { %v1520_v4 = vpop.f32.mrb[44].mxu0  ;;  %1532 = vmatprep.subr.bf16.mxu1 %v1001_v1 }
 0x4d7   :  { %v981_v5 = vpop.f32.mrb[45].mxu0 }
 0x4d8   :  { %v1521_v6 = vpop.f32.mrb[46].mxu0 }
 0x4d9   :  { %v1003_v7 = vpack.c.bf16 %v1521_v6, %v1520_v4  ;;  %v984_v8 = vpop.f32.mrb[47].mxu0  ;;  %1533 = vmatpush3.bf16.msra.mxu1 %v1001_v1 }
 0x4da   :  { %v1002_v9 = vpack.c.bf16 %v984_v8, %v981_v5 }
 0x4dc   :  { %1534 = vmatprep.subr.bf16.mxu1 %v1002_v9 }
 0x4dd   :  { %1535 = vmatpush3.bf16.msra.mxu1 %v1002_v9 }
 0x4de   :  { %1536 = vmatprep.subr.bf16.mxu1 %v1003_v7 }
 0x4e1   :  { %1537 = vmatpush3.bf16.msra.mxu1 %v1003_v7 }
 0x4e4   :  { %1539 = vmatmul.mubr.bf16.vlgmr.msra.gmra.mrb[32].mxu1 %v1603_v10 }
 0x4e5   :  { %1542 = vmatprep.mubr.bf16.mxu1 %v1604_v11 }
 0x4ec   :  { %1543 = vmatmul.mubr.bf16.gmra.mrb[36].mxu1 %v1605_v12 }
 0x4ed   :  { %1546 = vmatprep.mubr.bf16.mxu1 %v1606_v13 }
 0x4f4   :  { %1547 = vmatmul.mubr.bf16.gmra.mrb[40].mxu1 %v1607_v14 }
 0x4f5   :  { %1550 = vmatprep.mubr.bf16.mxu1 %v1608_v15 }
 0x4fc   :  { %1551 = vmatmul.mubr.bf16.gmra.mrb[44].mxu1 %v1609_v16 }
 0x5b7   :  { %v1540_v18 = vpop.f32.mrb[32].mxu1 }
 0x5b8   :  { %v1134_v19 = vadd.f32 %v1540_v18, %v1257_v17  ;;  %v1125_v20 = vpop.f32.mrb[33].mxu1 }
 0x5b9   :  { %v1126_v21 = vadd.f32 %v1257_v17, %v1125_v20  ;;  %v1541_v22 = vpop.f32.mrb[34].mxu1 }
 0x5ba   :  { %1190 = vst [vmem:[%s1873_s6 + $0x10] sm:$0xff] %v1134_v19  ;;  %v1137_v23 = vadd.f32 %v1541_v22, %v1257_v17  ;;  %v1128_v24 = vpop.f32.mrb[35].mxu1 }
 0x5bb   :  { %1188 = vst [vmem:[%s1873_s6] sm:$0xff] %v1126_v21  ;;  %v1129_v25 = vadd.f32 %v1257_v17, %v1128_v24 }
 0x5bc   :  { %1191 = vst [vmem:[%s1873_s6 + $0x18] sm:$0xff] %v1137_v23 }
 0x5bd   :  { %1189 = vst [vmem:[%s1873_s6 + $0x8] sm:$0xff] %v1129_v25 }
 0x5bf   :  { %v1544_v26 = vpop.f32.mrb[36].mxu1 }
 0x5c0   :  { %v1150_v27 = vadd.f32 %v1544_v26, %v1257_v17  ;;  %v1141_v28 = vpop.f32.mrb[37].mxu1 }
 0x5c1   :  { %v1142_v29 = vadd.f32 %v1257_v17, %v1141_v28  ;;  %v1545_v30 = vpop.f32.mrb[38].mxu1 }
 0x5c2   :  { %1194 = vst [vmem:[%s1873_s6 + $0x30] sm:$0xff] %v1150_v27  ;;  %v1153_v31 = vadd.f32 %v1545_v30, %v1257_v17  ;;  %v1144_v32 = vpop.f32.mrb[39].mxu1 }
 0x5c3   :  { %1192 = vst [vmem:[%s1873_s6 + $0x20] sm:$0xff] %v1142_v29  ;;  %v1145_v33 = vadd.f32 %v1257_v17, %v1144_v32 }
 0x5c4   :  { %1195 = vst [vmem:[%s1873_s6 + $0x38] sm:$0xff] %v1153_v31 }
 0x5c5   :  { %1193 = vst [vmem:[%s1873_s6 + $0x28] sm:$0xff] %v1145_v33 }
 0x5c7   :  { %v1548_v34 = vpop.f32.mrb[40].mxu1 }
 0x5c8   :  { %v1166_v35 = vadd.f32 %v1548_v34, %v1257_v17  ;;  %v1157_v36 = vpop.f32.mrb[41].mxu1 }
 0x5c9   :  { %v1158_v37 = vadd.f32 %v1257_v17, %v1157_v36  ;;  %v1549_v38 = vpop.f32.mrb[42].mxu1 }
 0x5ca   :  { %1198 = vst [vmem:[%s1873_s6 + $0x50] sm:$0xff] %v1166_v35  ;;  %v1169_v39 = vadd.f32 %v1549_v38, %v1257_v17  ;;  %v1160_v40 = vpop.f32.mrb[43].mxu1 }
 0x5cb   :  { %1196 = vst [vmem:[%s1873_s6 + $0x40] sm:$0xff] %v1158_v37  ;;  %v1161_v41 = vadd.f32 %v1257_v17, %v1160_v40 }
 0x5cc   :  { %1199 = vst [vmem:[%s1873_s6 + $0x58] sm:$0xff] %v1169_v39 }
 0x5cd   :  { %1197 = vst [vmem:[%s1873_s6 + $0x48] sm:$0xff] %v1161_v41 }
 0x5cf   :  { %v1552_v42 = vpop.f32.mrb[44].mxu1 }
 0x5d0   :  { %v1182_v43 = vadd.f32 %v1552_v42, %v1257_v17  ;;  %v1173_v44 = vpop.f32.mrb[45].mxu1 }
 0x5d1   :  { %v1174_v45 = vadd.f32 %v1257_v17, %v1173_v44  ;;  %v1553_v46 = vpop.f32.mrb[46].mxu1 }
 0x5d2   :  { %1202 = vst [vmem:[%s1873_s6 + $0x70] sm:$0xff] %v1182_v43  ;;  %v1185_v47 = vadd.f32 %v1553_v46, %v1257_v17  ;;  %v1176_v48 = vpop.f32.mrb[47].mxu1 }
 0x5d3   :  { %1200 = vst [vmem:[%s1873_s6 + $0x60] sm:$0xff] %v1174_v45  ;;  %v1177_v49 = vadd.f32 %v1257_v17, %v1176_v48 }
 0x5d4   :  { %1203 = vst [vmem:[%s1873_s6 + $0x78] sm:$0xff] %v1185_v47 }
 0x5d5   :  { %1201 = vst [vmem:[%s1873_s6 + $0x68] sm:$0xff] %v1177_v49 }

</bundles_post_ra>
